<compile_context>
chip_gen: v7x
topology: tpu7x:2x2x1
jax: 0.10.0
libtpu: 0.0.40
codegen_flags: <defaults>
</compile_context>

<pallas_src>
import numpy as np
import jax
import jax.numpy as jnp
from jax import lax
from jax.experimental import pallas as pl
from jax.experimental.pallas import tpu as pltpu


# ----------------------------- tiling helpers -------------------------------

def _tile(d, pref):
    """Largest multiple-of-128 divisor of d that is <= pref, else the full dim."""
    if d <= pref:
        return d
    for t in range(pref, 127, -128):
        if d % t == 0:
            return t
    return d


def _tile_m(m, pref=256):
    # NOTE: on v5e/v6e (128 MiB VMEM) this pref can be raised to 512-1024 for
    # large-M layers; kept conservative so it also fits v7x's 64 MiB VMEM.
    if m <= pref:
        return m
    for t in range(pref, 7, -8):
        if m % t == 0:
            return t
    return m


# --------------------------- fused matmul kernel -----------------------------

def _make_matmul_kernel(act, has_residual):
    """out = act(A @ B + bias) * scale + shift (+ residual); aux = [bias;scale;shift].
    f32 accumulation in VMEM scratch, output cast to o_ref.dtype on the last k step.
    NOTE: correctness relies on k being the innermost ("arbitrary") grid axis so the
    accumulator / residual block stay resident across the reduction."""

    def kernel(*refs):
        if has_residual:
            a_ref, b_ref, aux_ref, res_ref, o_ref, acc_ref = refs
        else:
            a_ref, b_ref, aux_ref, o_ref, acc_ref = refs
            res_ref = None
        k = pl.program_id(2)

        @pl.when(k == 0)
        def _():
            acc_ref[...] = jnp.zeros_like(acc_ref)

        acc_ref[...] += jnp.dot(a_ref[...], b_ref[...],
                                preferred_element_type=jnp.float32)

        @pl.when(k == pl.num_programs(2) - 1)
        def _():
            y = acc_ref[...] + aux_ref[0:1, :]          # bias
            if act == "relu":
                y = jnp.maximum(y, 0.0)
            elif act == "sigmoid":
                y = jax.nn.sigmoid(y)
            y = y * aux_ref[1:2, :] + aux_ref[2:3, :]   # eval-mode BN affine
            if has_residual:
                y = y + res_ref[...].astype(jnp.float32)
            o_ref[...] = y.astype(o_ref.dtype)

    return kernel


def fused_matmul(a, b, bias=None, scale=None, shift=None, act="none",
                 residual=None, out_dtype=jnp.bfloat16):
    """Tiled Pallas matmul: bf16 operands, f32 accumulation in VMEM scratch."""
    M, K = a.shape
    K2, N = b.shape
    assert K == K2
    a = a.astype(jnp.bfloat16)
    b = b.astype(jnp.bfloat16)
    bias = jnp.zeros((N,), jnp.float32) if bias is None else bias.astype(jnp.float32)
    scale = jnp.ones((N,), jnp.float32) if scale is None else scale.astype(jnp.float32)
    shift = jnp.zeros((N,), jnp.float32) if shift is None else shift.astype(jnp.float32)
    aux = jnp.stack([bias, scale, shift], axis=0)          # (3, N) single aux input

    tm = _tile_m(M)
    tn = _tile(N, 512)
    tk = _tile(K, 1024)
    grid = (M // tm, N // tn, K // tk)
    has_res = residual is not None

    in_specs = [
        pl.BlockSpec((tm, tk), lambda i, j, k: (i, k)),
        pl.BlockSpec((tk, tn), lambda i, j, k: (k, j)),
        pl.BlockSpec((3, tn), lambda i, j, k: (0, j)),
    ]
    operands = [a, b, aux]
    if has_res:
        in_specs.append(pl.BlockSpec((tm, tn), lambda i, j, k: (i, j)))
        operands.append(residual)

    return pl.pallas_call(
        _make_matmul_kernel(act, has_res),
        out_shape=jax.ShapeDtypeStruct((M, N), out_dtype),
        grid_spec=pltpu.PrefetchScalarGridSpec(
            num_scalar_prefetch=0,
            grid=grid,
            in_specs=in_specs,
            out_specs=pl.BlockSpec((tm, tn), lambda i, j, k: (i, j)),
            scratch_shapes=[pltpu.VMEM((tm, tn), jnp.float32)],
        ),
        compiler_params=pltpu.CompilerParams(
            dimension_semantics=("parallel", "parallel", "arbitrary"),
            vmem_limit_bytes=32 * 1024 * 1024,
        ),
    )(*operands)


# --------------------------- highway stack kernel ----------------------------

def _highway_stack_kernel(x_ref, w_ref, b_ref, o_ref):
    """All 4 highway layers; H|T merged into one (C,2C) bf16 weight per layer."""
    C = x_ref.shape[1]
    L = w_ref.shape[0]
    x = x_ref[...].astype(jnp.float32)
    for i in range(L):                                    # static unroll (4 layers)
        ht = jnp.dot(x.astype(jnp.bfloat16), w_ref[i],
                     preferred_element_type=jnp.float32) + b_ref[i]
        h = jnp.maximum(ht[:, :C], 0.0)
        t = jax.nn.sigmoid(ht[:, C:])
        x = h * t + x * (1.0 - t)
    o_ref[...] = x.astype(o_ref.dtype)


def highway_stack(x, W, b):
    """All 4 highway layers in one pallas_call (merged bf16 weights resident)."""
    M, C = x.shape
    L = W.shape[0]
    tm = _tile_m(M)
    return pl.pallas_call(
        _highway_stack_kernel,
        out_shape=jax.ShapeDtypeStruct((M, C), jnp.bfloat16),
        grid_spec=pltpu.PrefetchScalarGridSpec(
            num_scalar_prefetch=0,
            grid=(M // tm,),
            in_specs=[
                pl.BlockSpec((tm, C), lambda i: (i, 0)),
                pl.BlockSpec((L, C, 2 * C), lambda i: (0, 0, 0)),
                pl.BlockSpec((L, 1, 2 * C), lambda i: (0, 0, 0)),
            ],
            out_specs=pl.BlockSpec((tm, C), lambda i: (i, 0)),
        ),
        compiler_params=pltpu.CompilerParams(
            dimension_semantics=("parallel",),
            vmem_limit_bytes=32 * 1024 * 1024,
        ),
    )(x.astype(jnp.bfloat16), W, b)


# ------------------------------ GRU recurrence --------------------------------

def _gru_kernel(xp_ref, whh_ref, bhh_ref, o_ref):
    """One direction per grid step; time loop inside the kernel. Direction 1's
    time reversal (input read + output write) is folded into the index `idx`."""
    T, B, C = o_ref.shape
    d = pl.program_id(0)

    def body(s, h):
        idx = jnp.where(d == 1, T - 1 - s, s)
        xp = xp_ref[pl.ds(idx, 1), :, :, :][0].astype(jnp.float32)   # (3, B, C)
        gh = jnp.dot(h.astype(jnp.bfloat16), whh_ref[...],
                     preferred_element_type=jnp.float32) + bhh_ref[...]   # (B, 3C)
        r = jax.nn.sigmoid(xp[0] + gh[:, :C])
        z = jax.nn.sigmoid(xp[1] + gh[:, C:2 * C])
        n = jnp.tanh(xp[2] + r * gh[:, 2 * C:])
        h_new = (1.0 - z) * n + z * h
        o_ref[pl.ds(idx, 1), :, :] = h_new[None, :, :]
        return h_new

    lax.fori_loop(0, T, body, jnp.zeros((B, C), jnp.float32))


def gru_bidir(xproj, w_hh, b_hh):
    """Both GRU directions, grid=(2,) ("parallel": one direction per TC on v7x).
    xproj: (2, T, 3, B, C) bf16 (dir 1 in ORIGINAL time order; reversal in-kernel)."""
    _, T, _, B, C = xproj.shape
    return pl.pallas_call(
        _gru_kernel,
        out_shape=jax.ShapeDtypeStruct((2, T, B, C), jnp.float32),
        grid_spec=pltpu.PrefetchScalarGridSpec(
            num_scalar_prefetch=0,
            grid=(2,),
            in_specs=[
                pl.BlockSpec((None, T, 3, B, C), lambda d: (d, 0, 0, 0, 0)),
                pl.BlockSpec((None, C, 3 * C), lambda d: (d, 0, 0)),
                pl.BlockSpec((None, 1, 3 * C), lambda d: (d, 0, 0)),
            ],
            out_specs=pl.BlockSpec((None, T, B, C), lambda d: (d, 0, 0, 0)),
        ),
        compiler_params=pltpu.CompilerParams(
            dimension_semantics=("parallel",),
            vmem_limit_bytes=32 * 1024 * 1024,
        ),
    )(xproj, w_hh, b_hh)


# --------------------------- decoder recurrence kernel ------------------------

def _gru_cell_gates(gi, h, whh_ref, bhh_ref):
    """gi = x @ W_ih^T + b_ih (precomputed, f32). Returns the new hidden state."""
    C = h.shape[-1]
    gh = jnp.dot(h.astype(jnp.bfloat16), whh_ref[...],
                 preferred_element_type=jnp.float32) + bhh_ref[...]
    r = jax.nn.sigmoid(gi[:, :C] + gh[:, :C])
    z = jax.nn.sigmoid(gi[:, C:2 * C] + gh[:, C:2 * C])
    n = jnp.tanh(gi[:, 2 * C:] + r * gh[:, 2 * C:])
    return (1.0 - z) * n + z * h


def _decoder_kernel(pre_ref, enc_ref, pm_ref,
                    awx_ref, awc_ref, awhh_ref, abih_ref, abhh_ref,
                    qw_ref, vw_ref, pwh_ref, pwc_ref, pb_ref,
                    r1wih_ref, r1whh_ref, r1bih_ref, r1bhh_ref,
                    r2wih_ref, r2whh_ref, r2bih_ref, r2bhh_ref,
                    dec_ref, align_ref):
    """Full teacher-forced attention/decoder recurrence, all weights resident."""
    T_dec, B, _ = pre_ref.shape

    def step(t, carry):
        att_h, att_ctx, d_h1, d_h2 = carry
        pre_t = pre_ref[pl.ds(t, 1), :, :][0]                          # (B,128) bf16

        # attention GRU cell, input = [prenet_out | prev context]
        gi = (jnp.dot(pre_t, awx_ref[...], preferred_element_type=jnp.float32)
              + jnp.dot(att_ctx.astype(jnp.bfloat16), awc_ref[...],
                        preferred_element_type=jnp.float32)
              + abih_ref[...])
        att_h = _gru_cell_gates(gi, att_h, awhh_ref, abhh_ref)

        # Bahdanau attention
        pq = jnp.dot(att_h.astype(jnp.bfloat16), qw_ref[...],
                     preferred_element_type=jnp.float32)               # (B,256)
        en = jnp.tanh(pq[:, None, :] + pm_ref[...])                    # (B,T_enc,256)
        e = jnp.sum(en * vw_ref[...][None, :, :], axis=-1)             # (B,T_enc)
        e = e - jnp.max(e, axis=-1, keepdims=True)
        ex = jnp.exp(e)
        align = ex / jnp.sum(ex, axis=-1, keepdims=True)
        att_ctx = jnp.sum(enc_ref[...] * align[:, :, None], axis=1)    # (B,256)

        # project_to_decoder_in, input = [att_h | att_ctx]
        dec_x = (jnp.dot(att_h.astype(jnp.bfloat16), pwh_ref[...],
                         preferred_element_type=jnp.float32)
                 + jnp.dot(att_ctx.astype(jnp.bfloat16), pwc_ref[...],
                           preferred_element_type=jnp.float32)
                 + pb_ref[...])

        # two residual decoder GRU cells
        gi1 = jnp.dot(dec_x.astype(jnp.bfloat16), r1wih_ref[...],
                      preferred_element_type=jnp.float32) + r1bih_ref[...]
        d_h1 = _gru_cell_gates(gi1, d_h1, r1whh_ref, r1bhh_ref)
        dec_x = d_h1 + dec_x
        gi2 = jnp.dot(dec_x.astype(jnp.bfloat16), r2wih_ref[...],
                      preferred_element_type=jnp.float32) + r2bih_ref[...]
        d_h2 = _gru_cell_gates(gi2, d_h2, r2whh_ref, r2bhh_ref)
        dec_x = d_h2 + dec_x

        dec_ref[pl.ds(t, 1), :, :] = dec_x[None, :, :]
        align_ref[pl.ds(t, 1), :, :] = align[None, :, :]
        return (att_h, att_ctx, d_h1, d_h2)

    z = jnp.zeros((B, 256), jnp.float32)
    lax.fori_loop(0, T_dec, step, (z, z, z, z))


def decoder_recurrence(p, pre, enc, pm):
    """pre: (T_dec, B, 128) bf16; enc/pm: (B, T_enc, 256) f32. All weights VMEM-resident."""
    T_dec, B, _ = pre.shape
    T_enc = enc.shape[1]
    return pl.pallas_call(
        _decoder_kernel,
        out_shape=(jax.ShapeDtypeStruct((T_dec, B, 256), jnp.float32),
                   jax.ShapeDtypeStruct((T_dec, B, T_enc), jnp.float32)),
    )(pre, enc, pm,
      p["att_wih_pre"], p["att_wih_ctx"], p["att_whh"], p["att_bih"], p["att_bhh"],
      p["att_query_w"], p["att_v_w"],
      p["proj_wh"], p["proj_wc"], p["proj_b"],
      p["rnn1_wih"], p["rnn1_whh"], p["rnn1_bih"], p["rnn1_bhh"],
      p["rnn2_wih"], p["rnn2_whh"], p["rnn2_bih"], p["rnn2_bhh"])


# ----------------------------- composite blocks -------------------------------

def conv3_bn(x, W, scale, shift, act, residual=None):
    """k=3, stride 1, pad 1 conv (bias=False) + activation + eval BN (+ fused residual)."""
    B, T, Cin = x.shape
    Cout = W.shape[1]
    xp = jnp.pad(x, ((0, 0), (1, 1), (0, 0)))
    cols = jnp.concatenate([xp[:, j:j + T, :] for j in range(3)], axis=-1)  # bf16 im2col
    res = None if residual is None else residual.reshape(B * T, Cout)
    y = fused_matmul(cols.reshape(B * T, 3 * Cin), W, act=act,
                     scale=scale, shift=shift, residual=res)
    return y.reshape(B, T, Cout)


def cbhg_forward(x, p):
    """CBHG(in_dim=C, K, projections=[*, C]) -> (B, T, 2C).  x: (B, T, C) (bf16 or f32)."""
    B, T, C = x.shape
    M = B * T
    K = p["bank_W"].shape[0] // C
    half = K // 2

    # --- conv1d bank: all K widths fused into one block-structured matmul ---
    # TODO(synk): in-kernel halo loading would remove the im2col HBM amplification
    # entirely; here the im2col buffer is at least kept in bf16.
    xpad = jnp.pad(x, ((0, 0), (half, K - 1 - half), (0, 0)))
    cols = jnp.concatenate([xpad[:, j:j + T, :] for j in range(K)], axis=-1)   # (B,T,K*C)
    y = fused_matmul(cols.reshape(M, K * C), p["bank_W"], act="relu",
                     scale=p["bank_scale"], shift=p["bank_shift"])
    y = y.reshape(B, T, K * C)

    # --- MaxPool1d(kernel=2, stride=1, padding=1)[:, :, :T]  (plain XLA; fuses) ---
    yprev = jnp.pad(y, ((0, 0), (1, 0), (0, 0)), constant_values=-jnp.inf)[:, :T, :]
    y = jnp.maximum(y, yprev)

    # --- conv1d projections (k=3), residual add fused into the 2nd epilogue ---
    y = conv3_bn(y, p["proj1_W"], p["proj1_scale"], p["proj1_shift"], act="relu")
    y = conv3_bn(y, p["proj2_W"], p["proj2_scale"], p["proj2_shift"], act="none",
                 residual=x)
    # pre_highway skipped: projections[-1] == in_dim for both CBHGs in this model.

    # --- 4 highway layers (one fused kernel, merged H|T bf16 weights) ---
    y2 = highway_stack(y.reshape(M, C), p["hw_W"], p["hw_b"])

    # --- bidirectional GRU: one stacked fwd+bwd input projection, in-kernel
    #     time loop and direction-1 reversal (no XLA [::-1] passes) ---
    xproj = fused_matmul(y2, p["gru_w_ih"], bias=p["gru_b_ih"])                # (M, 6C) bf16
    xproj = xproj.reshape(B, T, 2, 3, C).transpose(2, 1, 3, 0, 4)              # (2,T,3,B,C)
    outs = gru_bidir(xproj, p["gru_w_hh"], p["gru_b_hh"])                      # (2,T,B,C) f32
    both = jnp.concatenate([outs[0], outs[1]], axis=-1)                        # (T,B,2C)
    return both.transpose(1, 0, 2)                                             # (B,T,2C)


def decoder_forward(p, encoder_outputs, targets):
    """Decoder_TacotronOne.forward with decoder inputs given (teacher forcing)."""
    B, T_enc, enc_dim = encoder_outputs.shape
    mel_r = p["pre_w1"].shape[0]                       # in_dim * r

    pm = fused_matmul(encoder_outputs.reshape(B * T_enc, enc_dim), p["memory_w"],
                      out_dtype=jnp.float32)
    processed_memory = pm.reshape(B, T_enc, 256)

    frames = targets.reshape(B, -1, mel_r)             # (B, T_dec, in_dim*r)
    T_dec = frames.shape[1]
    dec_in = jnp.concatenate([jnp.zeros((B, 1, mel_r), targets.dtype),
                              frames[:, :-1]], axis=1)

    # decoder prenet over every step at once (Pallas), eval dropout = identity
    h = dec_in.reshape(B * T_dec, mel_r)
    h = fused_matmul(h, p["pre_w1"], bias=p["pre_b1"], act="relu")
    h = fused_matmul(h, p["pre_w2"], bias=p["pre_b2"], act="relu")
    pre = h.reshape(B, T_dec, 128).transpose(1, 0, 2)  # (T_dec, B, 128) bf16

    # TODO(synk): greedy decoding with is_end_of_frames early-stop is not translated
    # (teacher forcing only).
    # TODO(synk): the source's unsqueeze(1) before the prenet is ignored; the standard
    # 2-D per-step Tacotron path is implemented.
    dec_states, aligns = decoder_recurrence(p, pre, encoder_outputs, processed_memory)

    mel = fused_matmul(dec_states.transpose(1, 0, 2).reshape(B * T_dec, 256),
                       p["mel_w"], bias=p["mel_b"], out_dtype=jnp.float32)
    mel = mel.reshape(B, T_dec, mel_r)
    return mel, aligns.transpose(1, 0, 2)


def tacotron_one_forward(params, tokens, targets, linear_dim=1025):
    """TacotronOne.forward(inputs, targets, input_lengths=None), eval, no memory mask."""
    B, T_in = tokens.shape
    mel_dim = targets.shape[-1]

    # embedding lookup (gather)  TODO(synk): left to XLA, no clean Pallas win at this size
    x = jnp.take(params["embedding"], tokens, axis=0)

    e = params["encoder"]
    h = x.reshape(B * T_in, -1)
    h = fused_matmul(h, e["pre_w1"], bias=e["pre_b1"], act="relu")
    h = fused_matmul(h, e["pre_w2"], bias=e["pre_b2"], act="relu")
    prenet_out = h.reshape(B, T_in, 128)                               # bf16
    encoder_outputs = cbhg_forward(prenet_out, e["cbhg"])              # (B, T_in, 256) f32

    mel_r_out, alignments = decoder_forward(params["decoder"], encoder_outputs, targets)
    mel_outputs = mel_r_out.reshape(B, -1, mel_dim)                    # (B, T_mel, mel_dim)
    T_mel = mel_outputs.shape[1]

    # TODO(synk): internal postnet lane-padding (80 -> 128) not applied; only the
    # final linear layer is lane-padded (1025 -> 1152).
    post = cbhg_forward(mel_outputs.astype(jnp.bfloat16), params["postnet"])
    lin = fused_matmul(post.reshape(B * T_mel, -1), params["last_w"],
                       bias=params["last_b"], out_dtype=jnp.float32)
    linear_outputs = lin[:, :linear_dim].reshape(B, T_mel, linear_dim)
    return mel_outputs, linear_outputs, alignments


# -------------------------------- parameters ---------------------------------

def _lin_w(k, fan_out, fan_in):
    return jax.random.normal(k, (fan_out, fan_in), jnp.float32) / np.sqrt(fan_in)


def _bn_affine(keys, ch, eps=1e-5):
    gamma = 1.0 + 0.1 * jax.random.normal(next(keys), (ch,), jnp.float32)
    beta = 0.1 * jax.random.normal(next(keys), (ch,), jnp.float32)
    mean = 0.1 * jax.random.normal(next(keys), (ch,), jnp.float32)
    var = 1.0 + 0.1 * jnp.abs(jax.random.normal(next(keys), (ch,), jnp.float32))
    scale = gamma / jnp.sqrt(var + eps)
    shift = beta - mean * scale
    return scale, shift


def _init_cbhg(keys, in_dim, K, projections):
    C = in_dim
    p = {}
    # conv1d bank: per-width conv weights packed into one block-structured matrix
    # TODO(synk): ~47% of bank_W is structural zeros; a scalar-prefetched dense packing
    # would cut the bank weight DMA / MXU flops further.
    Wbig = np.zeros((K * C, K * C), np.float32)
    scales, shifts = [], []
    half = K // 2
    for k in range(1, K + 1):
        w = np.asarray(jax.random.normal(next(keys), (C, C, k), jnp.float32)
                       / np.sqrt(C * k))
        for jt in range(k):
            r0 = (jt - k // 2 + half) * C
            c0 = (k - 1) * C
            Wbig[r0:r0 + C, c0:c0 + C] = w[:, :, jt].T
        s, sh = _bn_affine(keys, C)
        scales.append(s)
        shifts.append(sh)
    p["bank_W"] = jnp.asarray(Wbig).astype(jnp.bfloat16)
    p["bank_scale"] = jnp.concatenate(scales)
    p["bank_shift"] = jnp.concatenate(shifts)
    # conv1d projections (k=3, bias=False) + BN
    in_sizes = [K * C, projections[0]]
    for i, (cin, cout) in enumerate(zip(in_sizes, projections), 1):
        w = jax.random.normal(next(keys), (cout, cin, 3), jnp.float32) / np.sqrt(cin * 3)
        p[f"proj{i}_W"] = (jnp.transpose(w, (2, 1, 0))
                           .reshape(3 * cin, cout).astype(jnp.bfloat16))
        p[f"proj{i}_scale"], p[f"proj{i}_shift"] = _bn_affine(keys, cout)
    # 4 highway layers, H|T merged into one (C, 2C) weight (H bias 0, T bias -1)
    hw_W = []
    for _ in range(4):
        Hw = _lin_w(next(keys), C, C).T
        Tw = _lin_w(next(keys), C, C).T
        hw_W.append(jnp.concatenate([Hw, Tw], axis=1))
    p["hw_W"] = jnp.stack(hw_W).astype(jnp.bfloat16)                       # (4, C, 2C)
    p["hw_b"] = jnp.concatenate([jnp.zeros((4, 1, C), jnp.float32),
                                 -jnp.ones((4, 1, C), jnp.float32)], axis=-1)
    # bidirectional GRU (hidden = C)
    w_ih, w_hh, b_ih, b_hh = [], [], [], []
    for _ in range(2):
        w_ih.append(_lin_w(next(keys), 3 * C, C))
        w_hh.append(_lin_w(next(keys), 3 * C, C))
        b_ih.append(0.01 * jax.random.normal(next(keys), (3 * C,), jnp.float32))
        b_hh.append(0.01 * jax.random.normal(next(keys), (3 * C,), jnp.float32))
    p["gru_w_ih"] = jnp.concatenate([w_ih[0].T, w_ih[1].T],
                                    axis=1).astype(jnp.bfloat16)            # (C, 6C)
    p["gru_b_ih"] = jnp.concatenate(b_ih)                                    # (6C,)
    p["gru_w_hh"] = jnp.stack([w_hh[0].T, w_hh[1].T]).astype(jnp.bfloat16)   # (2, C, 3C)
    p["gru_b_hh"] = jnp.stack([b.reshape(1, 3 * C) for b in b_hh])           # (2, 1, 3C)
    return p


def _init_decoder(keys, mel_dim, r):
    p = {}
    mel_r = mel_dim * r
    p["pre_w1"] = _lin_w(next(keys), 256, mel_r).T.astype(jnp.bfloat16)      # (mel_r, 256)
    p["pre_b1"] = 0.01 * jax.random.normal(next(keys), (256,), jnp.float32)
    p["pre_w2"] = _lin_w(next(keys), 128, 256).T.astype(jnp.bfloat16)        # (256, 128)
    p["pre_b2"] = 0.01 * jax.random.normal(next(keys), (128,), jnp.float32)
    p["memory_w"] = _lin_w(next(keys), 256, 256).T.astype(jnp.bfloat16)      # bias=False
    # attention GRUCell(256+128, 256): input = [prenet(128) | context(256)]
    att_w_ih = _lin_w(next(keys), 3 * 256, 384)
    p["att_wih_pre"] = att_w_ih[:, :128].T.astype(jnp.bfloat16)              # (128, 768)
    p["att_wih_ctx"] = att_w_ih[:, 128:].T.astype(jnp.bfloat16)              # (256, 768)
    p["att_whh"] = _lin_w(next(keys), 3 * 256, 256).T.astype(jnp.bfloat16)   # (256, 768)
    p["att_bih"] = (0.01 * jax.random.normal(next(keys), (768,), jnp.float32)).reshape(1, 768)
    p["att_bhh"] = (0.01 * jax.random.normal(next(keys), (768,), jnp.float32)).reshape(1, 768)
    p["att_query_w"] = _lin_w(next(keys), 256, 256).T.astype(jnp.bfloat16)   # bias=False
    p["att_v_w"] = _lin_w(next(keys), 1, 256)                                # (1, 256), bias=False
    # project_to_decoder_in: input = [att_h(256) | att_ctx(256)]
    proj_w = _lin_w(next(keys), 256, 512)
    p["proj_wh"] = proj_w[:, :256].T.astype(jnp.bfloat16)                    # (256, 256)
    p["proj_wc"] = proj_w[:, 256:].T.astype(jnp.bfloat16)                    # (256, 256)
    p["proj_b"] = (0.01 * jax.random.normal(next(keys), (256,), jnp.float32)).reshape(1, 256)
    for i in (1, 2):
        p[f"rnn{i}_wih"] = _lin_w(next(keys), 3 * 256, 256).T.astype(jnp.bfloat16)
        p[f"rnn{i}_whh"] = _lin_w(next(keys), 3 * 256, 256).T.astype(jnp.bfloat16)
        p[f"rnn{i}_bih"] = (0.01 * jax.random.normal(next(keys), (768,),
                                                     jnp.float32)).reshape(1, 768)
        p[f"rnn{i}_bhh"] = (0.01 * jax.random.normal(next(keys), (768,),
                                                     jnp.float32)).reshape(1, 768)
    p["mel_w"] = _lin_w(next(keys), mel_r, 256).T.astype(jnp.bfloat16)       # (256, mel_r)
    p["mel_b"] = 0.01 * jax.random.normal(next(keys), (mel_r,), jnp.float32)
    return p


def init_params(key, n_vocab, embedding_dim=256, mel_dim=80, linear_dim=1025, r=5):
    keys = iter(jax.random.split(key, 512))
    p = {}
    p["embedding"] = 0.3 * jax.random.normal(next(keys), (n_vocab, embedding_dim),
                                             jnp.float32)
    enc = {}
    enc["pre_w1"] = _lin_w(next(keys), 256, embedding_dim).T.astype(jnp.bfloat16)
    enc["pre_b1"] = 0.01 * jax.random.normal(next(keys), (256,), jnp.float32)
    enc["pre_w2"] = _lin_w(next(keys), 128, 256).T.astype(jnp.bfloat16)
    enc["pre_b2"] = 0.01 * jax.random.normal(next(keys), (128,), jnp.float32)
    enc["cbhg"] = _init_cbhg(keys, 128, 16, [128, 128])
    p["encoder"] = enc
    p["decoder"] = _init_decoder(keys, mel_dim, r)
    p["postnet"] = _init_cbhg(keys, mel_dim, 8, [256, mel_dim])
    # last_linear: lane-pad N 1025 -> 1152 (9*128); sliced back outside the kernel.
    n_pad = ((linear_dim + 127) // 128) * 128
    lw = _lin_w(next(keys), linear_dim, mel_dim * 2).T                       # (160, 1025)
    p["last_w"] = jnp.pad(lw, ((0, 0), (0, n_pad - linear_dim))).astype(jnp.bfloat16)
    lb = 0.01 * jax.random.normal(next(keys), (linear_dim,), jnp.float32)
    p["last_b"] = jnp.pad(lb, (0, n_pad - linear_dim))
    return p


# ----------------------------------- main -------------------------------------

def _self_test_matmul(key):
    ka, kb = jax.random.split(key)
    a = jax.random.normal(ka, (32, 256), jnp.float32)
    b = jax.random.normal(kb, (256, 128), jnp.float32) / 16.0
    got = fused_matmul(a, b).astype(jnp.float32)
    want = a @ b
    err = float(jnp.max(jnp.abs(got - want)))
    assert err < 0.1, err


if __name__ == "__main__":
    key = jax.random.PRNGKey(0)
    kp, ki, kt, ks = jax.random.split(key, 4)

    n_vocab, B, T_in = 32, 2, 16
    mel_dim, linear_dim, r, T_dec = 80, 1025, 5, 4
    T_mel = T_dec * r

    _self_test_matmul(ks)

    params = init_params(kp, n_vocab, mel_dim=mel_dim, linear_dim=linear_dim, r=r)
    tokens = jax.random.randint(ki, (B, T_in), 0, n_vocab)
    targets = jax.random.normal(kt, (B, T_mel, mel_dim), jnp.float32)

    forward = jax.jit(tacotron_one_forward)
    mel, lin, align = forward(params, tokens, targets)
    jax.block_until_ready((mel, lin, align))

    assert mel.shape == (B, T_mel, mel_dim), mel.shape
    assert lin.shape == (B, T_mel, linear_dim), lin.shape
    assert align.shape == (B, T_dec, T_in), align.shape
    assert bool(jnp.all(jnp.isfinite(mel)))
    assert bool(jnp.all(jnp.isfinite(lin)))
    assert bool(jnp.all(jnp.isfinite(align)))
    print("KERNEL_OK")
</pallas_src>

<mosaic_0001>
module attributes {stable_mosaic.version = 11 : i64} {
  func.func @kernel(%arg0: i32, %arg1: i32, %arg2: i32, %arg3: memref<32x256xbf16, #tpu.memory_space<vmem>>, %arg4: memref<256x128xbf16, #tpu.memory_space<vmem>>, %arg5: memref<3x128xf32, #tpu.memory_space<vmem>>, %arg6: memref<32x128xbf16, #tpu.memory_space<vmem>>, %arg7: memref<32x128xf32, #tpu.memory_space<vmem>>) attributes {dimension_semantics = [#tpu.dimension_semantics<parallel>, #tpu.dimension_semantics<parallel>, #tpu.dimension_semantics<arbitrary>], iteration_bounds = array<i64: 1, 1, 1>, scalar_prefetch = 0 : i64, scratch_operands = 1 : i64, tpu.core_type = #tpu.core_type<tc>, window_params = [{transform_indices = @transform_0, window_bounds = array<i64: 32, 256>}, {transform_indices = @transform_1, window_bounds = array<i64: 256, 128>}, {transform_indices = @transform_2, window_bounds = array<i64: 3, 128>}, {transform_indices = @transform_3, window_bounds = array<i64: 32, 128>}]} {
    %c0_i32 = arith.constant 0 : i32
    %0 = arith.cmpi eq, %arg2, %c0_i32 : i32
    %1 = arith.extui %0 : i1 to i32
    %c0_i32_0 = arith.constant 0 : i32
    %2 = arith.cmpi ne, %1, %c0_i32_0 : i32
    scf.if %2 {
      %cst_10 = arith.constant 0.000000e+00 : f32
      %12 = vector.broadcast %cst_10 : f32 to vector<32x128xf32>
      %c0_11 = arith.constant 0 : index
      %c0_12 = arith.constant 0 : index
      %13 = vector.load %arg7[%c0_11, %c0_12] : memref<32x128xf32, #tpu.memory_space<vmem>>, vector<32x128xf32>
      tpu.vector_store %arg7[%c0_11, %c0_12], %12 {strides = array<i32>} : memref<32x128xf32, #tpu.memory_space<vmem>>, vector<32x128xf32>,
    } else {
    }
    %c0 = arith.constant 0 : index
    %c0_1 = arith.constant 0 : index
    %3 = vector.load %arg7[%c0, %c0_1] : memref<32x128xf32, #tpu.memory_space<vmem>>, vector<32x128xf32>
    %c0_2 = arith.constant 0 : index
    %c0_3 = arith.constant 0 : index
    %4 = vector.load %arg3[%c0_2, %c0_3] : memref<32x256xbf16, #tpu.memory_space<vmem>>, vector<32x256xbf16>
    %c0_4 = arith.constant 0 : index
    %c0_5 = arith.constant 0 : index
    %5 = vector.load %arg4[%c0_4, %c0_5] : memref<256x128xbf16, #tpu.memory_space<vmem>>, vector<256x128xbf16>
    %cst = arith.constant dense<0.000000e+00> : vector<32x128xf32>
    %6 = tpu.matmul %4, %5, %cst {dimension_numbers = #tpu.dot_dimension_numbers<[1], [0], [0], [1], [0, 0, 1, 1], [], []>} : vector<32x256xbf16>, vector<256x128xbf16>, vector<32x128xf32> -> vector<32x128xf32>
    %7 = arith.addf %3, %6 : vector<32x128xf32>
    %c0_6 = arith.constant 0 : index
    %c0_7 = arith.constant 0 : index
    %8 = vector.load %arg7[%c0_6, %c0_7] : memref<32x128xf32, #tpu.memory_space<vmem>>, vector<32x128xf32>
    tpu.vector_store %arg7[%c0_6, %c0_7], %7 {strides = array<i32>} : memref<32x128xf32, #tpu.memory_space<vmem>>, vector<32x128xf32>,
    %c0_i32_8 = arith.constant 0 : i32
    %9 = arith.cmpi eq, %arg2, %c0_i32_8 : i32
    %10 = arith.extui %9 : i1 to i32
    %c0_i32_9 = arith.constant 0 : i32
    %11 = arith.cmpi ne, %10, %c0_i32_9 : i32
    scf.if %11 {
      %c0_10 = arith.constant 0 : index
      %c0_11 = arith.constant 0 : index
      %12 = vector.load %arg7[%c0_10, %c0_11] : memref<32x128xf32, #tpu.memory_space<vmem>>, vector<32x128xf32>
      %c0_12 = arith.constant 0 : index
      %c0_13 = arith.constant 0 : index
      %13 = vector.load %arg5[%c0_12, %c0_13] : memref<3x128xf32, #tpu.memory_space<vmem>>, vector<1x128xf32>
      %14 = vector.broadcast %13 : vector<1x128xf32> to vector<32x128xf32>
      %15 = arith.addf %12, %14 : vector<32x128xf32>
      %c1 = arith.constant 1 : index
      %c0_14 = arith.constant 0 : index
      %16 = vector.load %arg5[%c1, %c0_14] : memref<3x128xf32, #tpu.memory_space<vmem>>, vector<1x128xf32>
      %17 = vector.broadcast %16 : vector<1x128xf32> to vector<32x128xf32>
      %18 = arith.mulf %15, %17 : vector<32x128xf32>
      %c2 = arith.constant 2 : index
      %c0_15 = arith.constant 0 : index
      %19 = vector.load %arg5[%c2, %c0_15] : memref<3x128xf32, #tpu.memory_space<vmem>>, vector<1x128xf32>
      %20 = vector.broadcast %19 : vector<1x128xf32> to vector<32x128xf32>
      %21 = arith.addf %18, %20 : vector<32x128xf32>
      %22 = arith.truncf %21 : vector<32x128xf32> to vector<32x128xbf16>
      %c0_16 = arith.constant 0 : index
      %c0_17 = arith.constant 0 : index
      %23 = vector.load %arg6[%c0_16, %c0_17] : memref<32x128xbf16, #tpu.memory_space<vmem>>, vector<32x128xbf16>
      tpu.vector_store %arg6[%c0_16, %c0_17], %22 {strides = array<i32>} : memref<32x128xbf16, #tpu.memory_space<vmem>>, vector<32x128xbf16>,
    } else {
    }
    return
  }
  func.func @transform_0(%arg0: i32, %arg1: i32, %arg2: i32) -> (i32, i32) {
    %c0_i32 = arith.constant 0 : i32
    return %arg0, %arg2 : i32, i32
  }
  func.func @transform_1(%arg0: i32, %arg1: i32, %arg2: i32) -> (i32, i32) {
    %c0_i32 = arith.constant 0 : i32
    return %arg2, %arg1 : i32, i32
  }
  func.func @transform_2(%arg0: i32, %arg1: i32, %arg2: i32) -> (i32, i32) {
    %c0_i32 = arith.constant 0 : i32
    %c0_i32_0 = arith.constant 0 : i32
    return %c0_i32, %arg1 : i32, i32
  }
  func.func @transform_3(%arg0: i32, %arg1: i32, %arg2: i32) -> (i32, i32) {
    %c0_i32 = arith.constant 0 : i32
    return %arg0, %arg1 : i32, i32
  }
}

</mosaic_0001>

<bundles_post_ra>
// kernel: tpu_custom_call.1
= control target key start
LH: loop header
LB: loop body
LE: loop exit
PB: predicated region body
PF: predicated region fallthrough
CT: control target
= control target key end

     0   :  { %8 = vsyncpa [#allocation4], 0  ;;  %s602_s0 = inlined_call_operand.hbm [shape: bf16[32,256], index: 0, kind: input, shape index: {}]   ;;  %s603_s1 = inlined_call_operand.hbm [shape: bf16[256,128], index: 1, kind: input, shape index: {}]   ;;  %s604_s2 = inlined_call_operand.vmem [shape: f32[3,128], index: 2, kind: input, shape index: {}]   ;;  %s605_s3 = inlined_call_operand.hbm [shape: bf16[32,128], index: 3, kind: output, shape index: {}]  }
   0x1   :  { %9 = vsyncpa [#allocation7], 0 }
   0x2   :  { %10 = vsyncpa [#allocation5], 0  ;;  %s524_s12 = smov [#allocation3]   ;;  %s452_s16 = scalar_lea.hbm %s602_s0, 512 }
   0x3   :  { %s16_s13 = sshll.u32 %s524_s12, 4  ;;  %p453_p0 = scmp.ne.s32.totalorder %s602_s0, %s452_s16  ;;  %s17_s13 = int_to_ptr.vmem [resolvable:$true] %s16_s13 }
   0x4   :  { %p456_p1 = scmp.lt.u32.totalorder %s452_s16, %s602_s0 }
   0x6   :  { %p458_p2 = pnand %p456_p1, %p453_p0 }
   0x8   :  { %461 = shalt.err (!%p458_p2)
}
   0x9   :  { %s462_s21 = scalar_lea.vmem %s17_s13, 512  ;;  %p467_p4 = scmp.lt.s32.totalorder %s17_s13, %s17_s13 }
   0xa   :  { %p463_p3 = scmp.ne.s32.totalorder %s17_s13, %s462_s21  ;;  %p468_p5 = scmp.lt.s32.totalorder %s462_s21, %s462_s21 }
   0xc   :  { %p469_p6 = por %p468_p5, %p467_p4 }
   0xe   :  { %p470_p7 = pnand %p469_p6, %p463_p3 }
  0x10   :  { %473 = shalt.err (!%p470_p7)
}
  0x11   :  { %s525_s22 = smov 128   ;;  %s526_s23 = smov 8  }
  0x12   :  { %22 = dma.hbm_to_vmem [thread:$0]  %s602_s0, 512, %s17_s13, [#allocation4], %s525_s22, %s525_s22, %s526_s23  }
  0x13   :  { %s527_s26 = smov [#allocation6]   ;;  %s474_s30 = scalar_lea.hbm %s603_s1, 2048 }
  0x14   :  { %s28_s27 = sshll.u32 %s527_s26, 4  ;;  %p475_p8 = scmp.ne.s32.totalorder %s603_s1, %s474_s30  ;;  %s29_s27 = int_to_ptr.vmem [resolvable:$true] %s28_s27 }
  0x15   :  { %p478_p9 = scmp.lt.u32.totalorder %s474_s30, %s603_s1 }
  0x17   :  { %p480_p10 = pnand %p478_p9, %p475_p8 }
  0x19   :  { %483 = shalt.err (!%p480_p10)
}
  0x1a   :  { %s484_s8 = scalar_lea.vmem %s29_s27, 2048  ;;  %p489_p12 = scmp.lt.s32.totalorder %s29_s27, %s29_s27 }
  0x1b   :  { %p485_p11 = scmp.ne.s32.totalorder %s29_s27, %s484_s8  ;;  %p490_p13 = scmp.lt.s32.totalorder %s484_s8, %s484_s8 }
  0x1d   :  { %p491_p0 = por %p490_p13, %p489_p12 }
  0x1f   :  { %p492_p1 = pnand %p491_p0, %p485_p11 }
  0x21   :  { %495 = shalt.err (!%p492_p1)
}
  0x22   :  { %s528_s0 = smov 64   ;;  %s529_s9 = smov 4  }
  0x23   :  { %34 = dma.hbm_to_vmem [thread:$0]  %s603_s1, 2048, %s29_s27, [#allocation7], %s528_s0, %s528_s0, %s529_s9  }
  0x24   :  { %518 = dma.done.wait [#allocation4], 512  }
  0x25   :  { %519 = vsyncadd [#allocation4], 4294966784 }
  0x26   :  { %520 = dma.done.wait [#allocation7], 2048  }
  0x27   :  { %521 = vsyncadd [#allocation7], 4294965248  ;;  %v430_v0 = vld [vmem:[#allocation6 + $0x40] sm:$0xff]   ;;  %v432_v2 = vld [vmem:[#allocation6 + $0x48] sm:$0xff]   ;;  %s530_s17 = smov [#allocation8]  }
  0x28   :  { %v431_v1 = vld [vmem:[#allocation6] sm:$0xff]   ;;  %379 = vmatprep.subr.bf16.mxu0 %v430_v0  ;;  %407 = vmatprep.subr.bf16.mxu1 %v430_v0  ;;  %v433_v3 = vld [vmem:[#allocation6 + $0x8] sm:$0xff]   ;;  %v434_v4 = vld [vmem:[#allocation6 + $0x50] sm:$0xff]   ;;  %s324_s18 = sshll.u32 %s530_s17, 4  ;;  %s325_s18 = int_to_ptr.vmem [resolvable:$true] %s324_s18 }
  0x29   :  { %380 = vmatpush3.bf16.msra.mxu0 %v431_v1  ;;  %415 = vmatpush3.bf16.msra.mxu1 %v431_v1  ;;  %v435_v5 = vld [vmem:[#allocation6 + $0x10] sm:$0xff]   ;;  %v436_v6 = vld [vmem:[#allocation6 + $0x58] sm:$0xff]   ;;  %v438_v8 = vld [vmem:[#allocation6 + $0x60] sm:$0xff]   ;;  %s496_s19 = scalar_lea.vmem %s325_s18, 256  ;;  %p501_p3 = scmp.lt.s32.totalorder %s325_s18, %s325_s18 }
  0x2a   :  { %381 = vmatprep.subr.bf16.mxu0 %v432_v2  ;;  %408 = vmatprep.subr.bf16.mxu1 %v432_v2  ;;  %v437_v7 = vld [vmem:[#allocation6 + $0x18] sm:$0xff]   ;;  %v439_v9 = vld [vmem:[#allocation6 + $0x20] sm:$0xff]   ;;  %v440_v10 = vld [vmem:[#allocation6 + $0x68] sm:$0xff]   ;;  %p497_p2 = scmp.ne.s32.totalorder %s325_s18, %s496_s19  ;;  %p502_p4 = scmp.lt.s32.totalorder %s496_s19, %s496_s19 }
  0x2b   :  { %v448_v11 = vld [vmem:[#allocation3 + $0x4] ss:$8 sps:$4 sm:$0xff]   ;;  %v451_v12 = vld [vmem:[#allocation3 + $0x14] ss:$8 sps:$4 sm:$0xff]   ;;  %v446_v18 = vld [vmem:[#allocation3] ss:$8 sps:$4 sm:$0xff]  }
  0x2c   :  { %v441_v13 = vld [vmem:[#allocation6 + $0x28] sm:$0xff]   ;;  %v442_v14 = vld [vmem:[#allocation6 + $0x70] sm:$0xff]   ;;  %240 = vmatprep.mubr.bf16.mxu0 %v448_v11  ;;  %248 = vmatprep.mubr.bf16.mxu1 %v451_v12  ;;  %v444_v16 = vld [vmem:[#allocation6 + $0x78] sm:$0xff]   ;;  %p503_p5 = por %p502_p4, %p501_p3 }
  0x2d   :  { %382 = vmatpush3.bf16.msra.mxu0 %v433_v3  ;;  %416 = vmatpush3.bf16.msra.mxu1 %v433_v3  ;;  %v443_v15 = vld [vmem:[#allocation6 + $0x30] sm:$0xff]   ;;  %v445_v17 = vld [vmem:[#allocation6 + $0x38] sm:$0xff]   ;;  %v357_v23 = vld [vmem:[%s604_s2] ss:$0 sm:$0xff] }
  0x2e   :  { %383 = vmatprep.subr.bf16.mxu0 %v434_v4  ;;  %409 = vmatprep.subr.bf16.mxu1 %v434_v4  ;;  %v449_v19 = vld [vmem:[#allocation3 + $0x10] ss:$8 sps:$4 sm:$0xff]   ;;  %v358_v29 = vld [vmem:[%s604_s2 + $0x1] ss:$0 sm:$0xff]  ;;  %v359_v40 = vld [vmem:[%s604_s2 + $0x2] ss:$0 sm:$0xff]  ;;  %p504_p6 = pnand %p503_p5, %p497_p2 }
  0x31   :  { %384 = vmatpush3.bf16.msra.mxu0 %v435_v5  ;;  %417 = vmatpush3.bf16.msra.mxu1 %v435_v5 }
  0x32   :  { %385 = vmatprep.subr.bf16.mxu0 %v436_v6  ;;  %410 = vmatprep.subr.bf16.mxu1 %v436_v6 }
  0x35   :  { %386 = vmatpush3.bf16.msra.mxu0 %v437_v7  ;;  %418 = vmatpush3.bf16.msra.mxu1 %v437_v7 }
  0x36   :  { %387 = vmatprep.subr.bf16.mxu0 %v438_v8  ;;  %411 = vmatprep.subr.bf16.mxu1 %v438_v8 }
  0x39   :  { %388 = vmatpush3.bf16.msra.mxu0 %v439_v9  ;;  %419 = vmatpush3.bf16.msra.mxu1 %v439_v9 }
  0x3a   :  { %389 = vmatprep.subr.bf16.mxu0 %v440_v10  ;;  %412 = vmatprep.subr.bf16.mxu1 %v440_v10 }
  0x3d   :  { %390 = vmatpush3.bf16.msra.mxu0 %v441_v13  ;;  %420 = vmatpush3.bf16.msra.mxu1 %v441_v13 }
  0x3e   :  { %391 = vmatprep.subr.bf16.mxu0 %v442_v14  ;;  %413 = vmatprep.subr.bf16.mxu1 %v442_v14 }
  0x41   :  { %392 = vmatpush3.bf16.msra.mxu0 %v443_v15  ;;  %421 = vmatpush3.bf16.msra.mxu1 %v443_v15 }
  0x42   :  { %393 = vmatprep.subr.bf16.mxu0 %v444_v16  ;;  %414 = vmatprep.subr.bf16.mxu1 %v444_v16 }
  0x45   :  { %394 = vmatpush3.bf16.msra.mxu0 %v445_v17  ;;  %422 = vmatpush3.bf16.msra.mxu1 %v445_v17 }
  0x48   :  { %241 = vmatmul.mubr.bf16.vlgmr.msra.gmra.mrb[0].mxu0 %v446_v18  ;;  %249 = vmatmul.mubr.bf16.vlgmr.msra.gmra.mrb[0].mxu1 %v449_v19 }
 0x11b   :  { %v395_v20 = vpop.f32.mrb[0].mxu0  ;;  %v401_v21 = vpop.f32.mrb[0].mxu1 }
 0x11c   :  { %v396_v22 = vpop.f32.mrb[1].mxu0  ;;  %v402_v24 = vpop.f32.mrb[1].mxu1 }
 0x11d   :  { %v397_v25 = vadd.f32 %v396_v22, %v395_v20  ;;  %v403_v26 = vadd.f32 %v402_v24, %v401_v21  ;;  %v398_v27 = vpop.f32.mrb[2].mxu0  ;;  %v404_v28 = vpop.f32.mrb[2].mxu1 }
 0x11e   :  { %v399_v30 = vpop.f32.mrb[3].mxu0  ;;  %v405_v31 = vpop.f32.mrb[3].mxu1 }
 0x11f   :  { %v277_v32 = vadd.f32 %v397_v25, %v357_v23  ;;  %v279_v33 = vadd.f32 %v403_v26, %v357_v23  ;;  %v400_v34 = vadd.f32 %v399_v30, %v398_v27  ;;  %v406_v35 = vadd.f32 %v405_v31, %v404_v28 }
 0x121   :  { %v286_v36 = vmul.f32 %v358_v29, %v277_v32  ;;  %v288_v37 = vmul.f32 %v358_v29, %v279_v33  ;;  %v278_v38 = vadd.f32 %v400_v34, %v357_v23  ;;  %v280_v39 = vadd.f32 %v406_v35, %v357_v23 }
 0x123   :  { %v287_v41 = vmul.f32 %v358_v29, %v278_v38  ;;  %v289_v42 = vmul.f32 %v358_v29, %v280_v39  ;;  %v295_v43 = vadd.f32 %v359_v40, %v286_v36  ;;  %v297_v44 = vadd.f32 %v359_v40, %v288_v37 }
 0x125   :  { %v296_v45 = vadd.f32 %v359_v40, %v287_v41  ;;  %v298_v46 = vadd.f32 %v359_v40, %v289_v42 }
 0x127   :  { %v371_v47 = vpack.c.bf16 %v296_v45, %v295_v43  ;;  %v376_v48 = vpack.c.bf16 %v298_v46, %v297_v44 }
 0x129   :  { %372 = vst [vmem:[#allocation8] sm:$0xff] %v371_v47   ;;  %378 = vst [vmem:[#allocation8 + $0x8] sm:$0xff] %v376_v48  }
 0x12a   :  { %507 = shalt.err (!%p504_p6)
}
 0x12b   :  { %s508_s21 = scalar_lea.hbm %s605_s3, 256 }
 0x12c   :  { %p509_p7 = scmp.ne.s32.totalorder %s605_s3, %s508_s21  ;;  %p512_p8 = scmp.lt.u32.totalorder %s508_s21, %s605_s3 }
 0x12e   :  { %p514_p9 = pnand %p512_p8, %p509_p7 }
 0x130   :  { %517 = shalt.err (!%p514_p9)
}
 0x131   :  { %330 = dma.vmem_to_hbm [thread:$0]  %s325_s18, 256, %s605_s3, [#allocation5], %s528_s0, %s528_s0, %s529_s9  }
 0x132   :  { %522 = dma.done.wait [#allocation5], 256  }
 0x133   :  { %523 = vsyncadd [#allocation5], 4294967040 }
 0x134   :  { %334 = vsyncpa [#allocation4], 1 }
 0x135   :  { %335 = vsyncpa [#allocation7], 1 }
 0x136   :  { %336 = vsyncpa [#allocation5], 1 }

</bundles_post_ra>
